<compile_context>
chip_gen: v5e
topology: v5e:2x2
jax: 0.10.0
libtpu: 0.0.40
codegen_flags: <defaults>
</compile_context>

<pallas_src>
import jax
import jax.numpy as jnp
from jax.experimental import pallas as pl
from jax.experimental.pallas import tpu as pltpu


def _relu6(x):
    return jnp.clip(x, 0.0, 6.0)


# ---------------------------------------------------------------------------
# Kernel: one fused pass over a (Cin, tile_m) column tile of the feature map.
# ---------------------------------------------------------------------------
def lffd_loss_branch_kernel(x_ref, w1_ref, b1_ref, w2_ref, b2_ref,
                            w3_ref, b3_ref, out_ref):
    x = x_ref[...]                                        # (Cin, tile_m) f32
    cin = x.shape[0]

    # shared trunk: 1x1 conv + folded BN + ReLU6
    if cin <= 16:
        # K is tiny: do the conv as VPU broadcast-FMAs instead of an MXU
        # matmul (push count scales with the (C1, tile) output, not with K).
        w1 = w1_ref[...]                                  # (C1, Cin) f32
        h = w1[:, 0:1] * x[0:1, :]
        for k in range(1, cin):
            h = h + w1[:, k:k + 1] * x[k:k + 1, :]
    else:
        h = jnp.dot(w1_ref[...].astype(jnp.bfloat16),
                    x.astype(jnp.bfloat16),
                    preferred_element_type=jnp.float32)
    h = _relu6(h + b1_ref[...])                           # (C1, tile_m) f32

    # fused score/location first convs (+folded BN) + ReLU6, one bf16 matmul
    h2 = jnp.dot(w2_ref[...], h.astype(jnp.bfloat16),
                 preferred_element_type=jnp.float32) + b2_ref[...]
    h2 = _relu6(h2)                                       # (2*C1, tile_m) f32

    # block-diagonal final projection -> [score ; locations ; zero-pad] rows
    out = jnp.dot(w3_ref[...], h2.astype(jnp.bfloat16),
                  preferred_element_type=jnp.float32) + b3_ref[...]
    out_ref[...] = out.astype(out_ref.dtype)              # (Cout_pad, tile_m)


# ---------------------------------------------------------------------------
# Spatial-tile selection helper (in 128-lane blocks).
# ---------------------------------------------------------------------------
def _choose_tile_blocks(q, batch, max_blocks):
    """q = number of 128-wide spatial blocks; returns blocks-per-tile."""
    # Prefer a divisor of q so the only spatial padding is the 128 alignment
    # (avoids an extra HBM slice-copy of the output).
    d = 1
    for cand in range(min(q, max_blocks), 0, -1):
        if q % cand == 0:
            d = cand
            break
    # If q's divisors are pathologically small, accept tile padding instead.
    if 4 * d < min(q, max_blocks):
        d = min(q, max_blocks)
    # v7x megacore: keep at least 2 grid steps when the work allows it.
    n_tiles = -(-q // d)
    if batch * n_tiles < 2 and q > 1:
        d = -(-q // 2)
    return d


# ---------------------------------------------------------------------------
# Wrapper: NCHW -> (N, Cin, H*W) reshape only, tile the spatial axis.
# ---------------------------------------------------------------------------
def lffd_loss_branch(x_nchw, kparams, *, tile_m=8192):
    """x_nchw: (N, Cin, H, W) f32.  kparams from fuse_params_channels_first.
    Returns (N, num_classes + 4, H, W)."""
    N, Cin, H, W = x_nchw.shape
    HW = H * W
    w1t, b1c, w2t, b2c, w3t, b3c, cout_true = kparams
    C1 = w1t.shape[0]
    C2 = w2t.shape[0]
    Cout = w3t.shape[0]                                    # padded to mult of 8

    q = -(-HW // 128)                                      # 128-lane blocks
    max_blocks = max(1, tile_m // 128)
    d = _choose_tile_blocks(q, N, max_blocks)
    tile = d * 128
    n_tiles = -(-q // d)
    HW_pad = n_tiles * tile

    x = x_nchw.reshape(N, Cin, HW)
    if HW_pad != HW:
        x = jnp.pad(x, ((0, 0), (0, 0), (0, HW_pad - HW)))

    full = lambda a: pl.BlockSpec(a.shape, lambda n, j: (0, 0))

    m_total = N * HW_pad
    flops = 2 * m_total * (Cin * C1 + C1 * C2 + C2 * Cout)
    bytes_accessed = int(
        x.size * x.dtype.itemsize + N * Cout * HW_pad * 4
        + sum(int(a.size) * a.dtype.itemsize
              for a in (w1t, b1c, w2t, b2c, w3t, b3c)))

    out = pl.pallas_call(
        lffd_loss_branch_kernel,
        out_shape=jax.ShapeDtypeStruct((N, Cout, HW_pad), jnp.float32),
        grid=(N, n_tiles),
        in_specs=[
            pl.BlockSpec((None, Cin, tile), lambda n, j: (n, 0, j)),
            full(w1t), full(b1c),
            full(w2t), full(b2c),
            full(w3t), full(b3c),
        ],
        out_specs=pl.BlockSpec((None, Cout, tile), lambda n, j: (n, 0, j)),
        compiler_params=pltpu.CompilerParams(
            dimension_semantics=("parallel", "parallel"),
            vmem_limit_bytes=32 * 1024 * 1024),
        cost_estimate=pl.CostEstimate(
            flops=flops, transcendentals=0, bytes_accessed=bytes_accessed),
    )(x, w1t, b1c, w2t, b2c, w3t, b3c)

    # Drop the zero-padded output channel(s) and any spatial padding.
    out = out[:, :cout_true, :HW]
    return out.reshape(N, cout_true, H, W)


# ---------------------------------------------------------------------------
# Parameter construction (eval-mode BN folding) + fusion for the kernel.
# ---------------------------------------------------------------------------
def fold_bn(w, b, gamma, beta, mean, var, eps=1e-5):
    """Fold BatchNorm (eval) into a 1x1-conv expressed as (Cin, Cout) matmul."""
    scale = gamma / jnp.sqrt(var + eps)
    return w * scale[None, :], b * scale + (beta - mean * scale)


def make_params(key, in_channels, out_channels=64, num_classes=3):
    """Returns BN-folded per-layer params in (Cin, Cout) matmul layout,
    biases as (1, C) rows (used by the pure-JAX reference)."""
    ks = jax.random.split(key, 16)
    f32 = jnp.float32

    def conv_w(k, cin, cout, scale=0.1):
        return (scale * jax.random.normal(k, (cin, cout))).astype(f32)

    def conv_b(k, cout, scale=0.05):
        return (scale * jax.random.normal(k, (cout,))).astype(f32)

    def bn(k, c):
        g = (1.0 + 0.1 * jax.random.normal(k, (c,))).astype(f32)
        bt = (0.1 * jax.random.normal(jax.random.fold_in(k, 1), (c,))).astype(f32)
        mean = (0.05 * jax.random.normal(jax.random.fold_in(k, 2), (c,))).astype(f32)
        var = (1.0 + 0.1 * jax.random.uniform(jax.random.fold_in(k, 3), (c,))).astype(f32)
        return g, bt, mean, var

    # trunk: conv1x1 + BN
    w1 = conv_w(ks[0], in_channels, out_channels)
    b1 = conv_b(ks[1], out_channels)
    w1, b1 = fold_bn(w1, b1, *bn(ks[2], out_channels))

    # score branch: conv1x1 + BN + ReLU6 + conv1x1(num_classes)
    w2s = conv_w(ks[3], out_channels, out_channels)
    b2s = conv_b(ks[4], out_channels)
    w2s, b2s = fold_bn(w2s, b2s, *bn(ks[5], out_channels))
    w3s = conv_w(ks[6], out_channels, num_classes)
    b3s = conv_b(ks[7], num_classes)

    # locations branch: conv1x1 + BN + ReLU6 + conv1x1(4)
    w2l = conv_w(ks[8], out_channels, out_channels)
    b2l = conv_b(ks[9], out_channels)
    w2l, b2l = fold_bn(w2l, b2l, *bn(ks[10], out_channels))
    w3l = conv_w(ks[11], out_channels, 4)
    b3l = conv_b(ks[12], 4)

    row = lambda v: v.reshape(1, -1)
    return (w1, row(b1), w2s, row(b2s), w3s, row(b3s),
            w2l, row(b2l), w3l, row(b3l))


def fuse_params_channels_first(params):
    """Fuse score/location heads, pad Cout to a multiple of 8, transpose to
    channels-first kernel layout; MXU weights stored bf16, biases f32."""
    (w1, b1, w2s, b2s, w3s, b3s, w2l, b2l, w3l, b3l) = params
    C1 = w1.shape[1]
    nc, nl = w3s.shape[1], w3l.shape[1]
    cout_true = nc + nl
    cout_pad = ((cout_true + 7) // 8) * 8

    # trunk weights stay f32 (used on the VPU path for small Cin)
    w1t = jnp.asarray(w1.T, jnp.float32)                       # (C1, Cin)
    b1c = b1.reshape(-1, 1).astype(jnp.float32)                # (C1, 1)

    # one (2*C1, C1) bf16 weight: rows [0:C1)=score conv1, [C1:2*C1)=loc conv1
    w2t = jnp.concatenate([w2s.T, w2l.T], axis=0).astype(jnp.bfloat16)
    b2c = jnp.concatenate([b2s.reshape(-1, 1), b2l.reshape(-1, 1)],
                          axis=0).astype(jnp.float32)

    # block-diagonal final projection (Cout_pad, 2*C1), zero-padded rows
    w3t = jnp.zeros((cout_pad, 2 * C1), jnp.float32)
    w3t = w3t.at[:nc, :C1].set(w3s.T)
    w3t = w3t.at[nc:cout_true, C1:].set(w3l.T)
    w3t = w3t.astype(jnp.bfloat16)
    b3c = jnp.zeros((cout_pad, 1), jnp.float32)
    b3c = b3c.at[:nc, 0].set(b3s.reshape(-1))
    b3c = b3c.at[nc:cout_true, 0].set(b3l.reshape(-1))

    return (w1t, b1c, w2t, b2c, w3t, b3c, cout_true)


# ---------------------------------------------------------------------------
# Pure-JAX f32 reference of the same (BN-folded) forward pass.
# ---------------------------------------------------------------------------
def reference(x_nchw, params, num_classes=3):
    (w1, b1, w2s, b2s, w3s, b3s, w2l, b2l, w3l, b3l) = params
    N, Cin, H, W = x_nchw.shape
    x = jnp.transpose(x_nchw, (0, 2, 3, 1)).reshape(-1, Cin)
    h = _relu6(x @ w1 + b1)
    score = _relu6(h @ w2s + b2s) @ w3s + b3s
    loc = _relu6(h @ w2l + b2l) @ w3l + b3l
    out = jnp.concatenate([score, loc], axis=-1)
    return jnp.transpose(out.reshape(N, H, W, num_classes + 4), (0, 3, 1, 2))


if __name__ == "__main__":
    key = jax.random.PRNGKey(0)
    k_x, k_p = jax.random.split(key)

    # small shapes: batch=2, in_channels=4, spatial=16x16
    N, Cin, H, W = 2, 4, 16, 16
    x = jax.random.normal(k_x, (N, Cin, H, W), dtype=jnp.float32)

    raw_params = make_params(k_p, in_channels=Cin, out_channels=64, num_classes=3)
    kernel_params = fuse_params_channels_first(raw_params)

    out = lffd_loss_branch(x, kernel_params, tile_m=8192)
    out = jax.block_until_ready(out)

    ref = reference(x, raw_params, num_classes=3)
    assert out.shape == (N, 7, H, W), out.shape
    # Tolerance loosened vs. the pure-f32 version: MXU operands are bf16
    # (accumulation stays f32), so per-element error is ~1e-3 scale.
    assert jnp.allclose(out, ref, atol=2e-2, rtol=2e-2), \
        float(jnp.max(jnp.abs(out - ref)))

    print("KERNEL_OK")
</pallas_src>

<mosaic_0001>
module attributes {stable_mosaic.version = 11 : i64} {
  func.func @lffd_loss_branch_kernel(%arg0: i32, %arg1: i32, %arg2: memref<1x4x256xf32, #tpu.memory_space<vmem>>, %arg3: memref<64x4xf32, #tpu.memory_space<vmem>>, %arg4: memref<64x1xf32, #tpu.memory_space<vmem>>, %arg5: memref<128x64xbf16, #tpu.memory_space<vmem>>, %arg6: memref<128x1xf32, #tpu.memory_space<vmem>>, %arg7: memref<8x128xbf16, #tpu.memory_space<vmem>>, %arg8: memref<8x1xf32, #tpu.memory_space<vmem>>, %arg9: memref<1x8x256xf32, #tpu.memory_space<vmem>>) attributes {dimension_semantics = [#tpu.dimension_semantics<parallel>, #tpu.dimension_semantics<parallel>], iteration_bounds = array<i64: 2, 1>, scalar_prefetch = 0 : i64, scratch_operands = 0 : i64, tpu.core_type = #tpu.core_type<tc>, window_params = [{transform_indices = @transform_0, window_bounds = array<i64: 1, 4, 256>}, {pipeline_mode = #tpu.pipeline_mode<synchronous>, transform_indices = @transform_1, window_bounds = array<i64: 64, 4>}, {pipeline_mode = #tpu.pipeline_mode<synchronous>, transform_indices = @transform_2, window_bounds = array<i64: 64, 1>}, {pipeline_mode = #tpu.pipeline_mode<synchronous>, transform_indices = @transform_3, window_bounds = array<i64: 128, 64>}, {pipeline_mode = #tpu.pipeline_mode<synchronous>, transform_indices = @transform_4, window_bounds = array<i64: 128, 1>}, {pipeline_mode = #tpu.pipeline_mode<synchronous>, transform_indices = @transform_5, window_bounds = array<i64: 8, 128>}, {pipeline_mode = #tpu.pipeline_mode<synchronous>, transform_indices = @transform_6, window_bounds = array<i64: 8, 1>}, {transform_indices = @transform_7, window_bounds = array<i64: 1, 8, 256>}]} {
    %c0 = arith.constant 0 : index
    %c0_0 = arith.constant 0 : index
    %c0_1 = arith.constant 0 : index
    %0 = vector.load %arg2[%c0, %c0_0, %c0_1] : memref<1x4x256xf32, #tpu.memory_space<vmem>>, vector<1x4x256xf32>
    %1 = vector.shape_cast %0 : vector<1x4x256xf32> to vector<4x256xf32>
    %c0_2 = arith.constant 0 : index
    %c0_3 = arith.constant 0 : index
    %2 = vector.load %arg3[%c0_2, %c0_3] : memref<64x4xf32, #tpu.memory_space<vmem>>, vector<64x4xf32>
    %3 = vector.extract_strided_slice %2 {offsets = [0, 0], sizes = [64, 1], strides = [1, 1]} : vector<64x4xf32> to vector<64x1xf32>
    %4 = vector.extract_strided_slice %1 {offsets = [0, 0], sizes = [1, 256], strides = [1, 1]} : vector<4x256xf32> to vector<1x256xf32>
    %5 = vector.broadcast %3 : vector<64x1xf32> to vector<64x256xf32>
    %6 = vector.broadcast %4 : vector<1x256xf32> to vector<64x256xf32>
    %7 = arith.mulf %5, %6 : vector<64x256xf32>
    %8 = vector.extract_strided_slice %2 {offsets = [0, 1], sizes = [64, 1], strides = [1, 1]} : vector<64x4xf32> to vector<64x1xf32>
    %9 = vector.extract_strided_slice %1 {offsets = [1, 0], sizes = [1, 256], strides = [1, 1]} : vector<4x256xf32> to vector<1x256xf32>
    %10 = vector.broadcast %8 : vector<64x1xf32> to vector<64x256xf32>
    %11 = vector.broadcast %9 : vector<1x256xf32> to vector<64x256xf32>
    %12 = arith.mulf %10, %11 : vector<64x256xf32>
    %13 = arith.addf %7, %12 : vector<64x256xf32>
    %14 = vector.extract_strided_slice %2 {offsets = [0, 2], sizes = [64, 1], strides = [1, 1]} : vector<64x4xf32> to vector<64x1xf32>
    %15 = vector.extract_strided_slice %1 {offsets = [2, 0], sizes = [1, 256], strides = [1, 1]} : vector<4x256xf32> to vector<1x256xf32>
    %16 = vector.broadcast %14 : vector<64x1xf32> to vector<64x256xf32>
    %17 = vector.broadcast %15 : vector<1x256xf32> to vector<64x256xf32>
    %18 = arith.mulf %16, %17 : vector<64x256xf32>
    %19 = arith.addf %13, %18 : vector<64x256xf32>
    %20 = vector.extract_strided_slice %2 {offsets = [0, 3], sizes = [64, 1], strides = [1, 1]} : vector<64x4xf32> to vector<64x1xf32>
    %21 = vector.extract_strided_slice %1 {offsets = [3, 0], sizes = [1, 256], strides = [1, 1]} : vector<4x256xf32> to vector<1x256xf32>
    %22 = vector.broadcast %20 : vector<64x1xf32> to vector<64x256xf32>
    %23 = vector.broadcast %21 : vector<1x256xf32> to vector<64x256xf32>
    %24 = arith.mulf %22, %23 : vector<64x256xf32>
    %25 = arith.addf %19, %24 : vector<64x256xf32>
    %c0_4 = arith.constant 0 : index
    %c0_5 = arith.constant 0 : index
    %26 = vector.load %arg4[%c0_4, %c0_5] : memref<64x1xf32, #tpu.memory_space<vmem>>, vector<64x1xf32>
    %27 = vector.broadcast %26 : vector<64x1xf32> to vector<64x256xf32>
    %28 = arith.addf %25, %27 : vector<64x256xf32>
    %cst = arith.constant 0.000000e+00 : f32
    %cst_6 = arith.constant 6.000000e+00 : f32
    %29 = vector.broadcast %cst : f32 to vector<64x256xf32>
    %30 = arith.maximumf %29, %28 : vector<64x256xf32>
    %31 = vector.broadcast %cst_6 : f32 to vector<64x256xf32>
    %32 = arith.minimumf %31, %30 : vector<64x256xf32>
    %c0_7 = arith.constant 0 : index
    %c0_8 = arith.constant 0 : index
    %33 = vector.load %arg5[%c0_7, %c0_8] : memref<128x64xbf16, #tpu.memory_space<vmem>>, vector<128x64xbf16>
    %34 = arith.truncf %32 : vector<64x256xf32> to vector<64x256xbf16>
    %cst_9 = arith.constant dense<0.000000e+00> : vector<128x256xf32>
    %35 = tpu.matmul %33, %34, %cst_9 {dimension_numbers = #tpu.dot_dimension_numbers<[1], [0], [0], [1], [0, 0, 1, 1], [], []>} : vector<128x64xbf16>, vector<64x256xbf16>, vector<128x256xf32> -> vector<128x256xf32>
    %c0_10 = arith.constant 0 : index
    %c0_11 = arith.constant 0 : index
    %36 = vector.load %arg6[%c0_10, %c0_11] : memref<128x1xf32, #tpu.memory_space<vmem>>, vector<128x1xf32>
    %37 = vector.broadcast %36 : vector<128x1xf32> to vector<128x256xf32>
    %38 = arith.addf %35, %37 : vector<128x256xf32>
    %cst_12 = arith.constant 0.000000e+00 : f32
    %cst_13 = arith.constant 6.000000e+00 : f32
    %39 = vector.broadcast %cst_12 : f32 to vector<128x256xf32>
    %40 = arith.maximumf %39, %38 : vector<128x256xf32>
    %41 = vector.broadcast %cst_13 : f32 to vector<128x256xf32>
    %42 = arith.minimumf %41, %40 : vector<128x256xf32>
    %c0_14 = arith.constant 0 : index
    %c0_15 = arith.constant 0 : index
    %43 = vector.load %arg7[%c0_14, %c0_15] : memref<8x128xbf16, #tpu.memory_space<vmem>>, vector<8x128xbf16>
    %44 = arith.truncf %42 : vector<128x256xf32> to vector<128x256xbf16>
    %cst_16 = arith.constant dense<0.000000e+00> : vector<8x256xf32>
    %45 = tpu.matmul %43, %44, %cst_16 {dimension_numbers = #tpu.dot_dimension_numbers<[1], [0], [0], [1], [0, 0, 1, 1], [], []>} : vector<8x128xbf16>, vector<128x256xbf16>, vector<8x256xf32> -> vector<8x256xf32>
    %c0_17 = arith.constant 0 : index
    %c0_18 = arith.constant 0 : index
    %46 = vector.load %arg8[%c0_17, %c0_18] : memref<8x1xf32, #tpu.memory_space<vmem>>, vector<8x1xf32>
    %47 = vector.broadcast %46 : vector<8x1xf32> to vector<8x256xf32>
    %48 = arith.addf %45, %47 : vector<8x256xf32>
    %c0_19 = arith.constant 0 : index
    %c0_20 = arith.constant 0 : index
    %c0_21 = arith.constant 0 : index
    %49 = vector.load %arg9[%c0_19, %c0_20, %c0_21] : memref<1x8x256xf32, #tpu.memory_space<vmem>>, vector<1x8x256xf32>
    %50 = vector.shape_cast %49 : vector<1x8x256xf32> to vector<8x256xf32>
    %51 = vector.shape_cast %48 : vector<8x256xf32> to vector<1x8x256xf32>
    tpu.vector_store %arg9[%c0_19, %c0_20, %c0_21], %51 {strides = array<i32>} : memref<1x8x256xf32, #tpu.memory_space<vmem>>, vector<1x8x256xf32>,
    return
  }
  func.func @transform_0(%arg0: i32, %arg1: i32) -> (i32, i32, i32) {
    %c0_i32 = arith.constant 0 : i32
    %c0_i32_0 = arith.constant 0 : i32
    return %arg0, %c0_i32, %arg1 : i32, i32, i32
  }
  func.func @transform_1(%arg0: i32, %arg1: i32) -> (i32, i32) {
    %c0_i32 = arith.constant 0 : i32
    %c0_i32_0 = arith.constant 0 : i32
    %c0_i32_1 = arith.constant 0 : i32
    return %c0_i32, %c0_i32_0 : i32, i32
  }
  func.func @transform_2(%arg0: i32, %arg1: i32) -> (i32, i32) {
    %c0_i32 = arith.constant 0 : i32
    %c0_i32_0 = arith.constant 0 : i32
    %c0_i32_1 = arith.constant 0 : i32
    return %c0_i32, %c0_i32_0 : i32, i32
  }
  func.func @transform_3(%arg0: i32, %arg1: i32) -> (i32, i32) {
    %c0_i32 = arith.constant 0 : i32
    %c0_i32_0 = arith.constant 0 : i32
    %c0_i32_1 = arith.constant 0 : i32
    return %c0_i32, %c0_i32_0 : i32, i32
  }
  func.func @transform_4(%arg0: i32, %arg1: i32) -> (i32, i32) {
    %c0_i32 = arith.constant 0 : i32
    %c0_i32_0 = arith.constant 0 : i32
    %c0_i32_1 = arith.constant 0 : i32
    return %c0_i32, %c0_i32_0 : i32, i32
  }
  func.func @transform_5(%arg0: i32, %arg1: i32) -> (i32, i32) {
    %c0_i32 = arith.constant 0 : i32
    %c0_i32_0 = arith.constant 0 : i32
    %c0_i32_1 = arith.constant 0 : i32
    return %c0_i32, %c0_i32_0 : i32, i32
  }
  func.func @transform_6(%arg0: i32, %arg1: i32) -> (i32, i32) {
    %c0_i32 = arith.constant 0 : i32
    %c0_i32_0 = arith.constant 0 : i32
    %c0_i32_1 = arith.constant 0 : i32
    return %c0_i32, %c0_i32_0 : i32, i32
  }
  func.func @transform_7(%arg0: i32, %arg1: i32) -> (i32, i32, i32) {
    %c0_i32 = arith.constant 0 : i32
    %c0_i32_0 = arith.constant 0 : i32
    return %arg0, %c0_i32, %arg1 : i32, i32, i32
  }
}

</mosaic_0001>

<bundles_post_ra>
// kernel: tpu_custom_call.1
= control target key start
LH: loop header
LB: loop body
LE: loop exit
PB: predicated region body
PF: predicated region fallthrough
CT: control target
= control target key end

     0   :  { %12 = vsyncpa [#allocation3], 0  ;;  %s1959_s0 = inlined_call_operand.vmem [shape: f32[2,4,256], index: 0, kind: input, shape index: {}]   ;;  %s1960_s1 = inlined_call_operand.vmem [shape: f32[64,4], index: 1, kind: input, shape index: {}]   ;;  %s1961_s2 = inlined_call_operand.vmem [shape: f32[64,1], index: 2, kind: input, shape index: {}]   ;;  %s1962_s3 = inlined_call_operand.vmem [shape: bf16[128,64], index: 3, kind: input, shape index: {}]   ;;  %s1963_s4 = inlined_call_operand.vmem [shape: f32[128,1], index: 4, kind: input, shape index: {}]   ;;  %s1964_s5 = inlined_call_operand.vmem [shape: bf16[8,128], index: 5, kind: input, shape index: {}]   ;;  %s1965_s6 = inlined_call_operand.vmem [shape: f32[8,1], index: 6, kind: input, shape index: {}]   ;;  %s1966_s7 = inlined_call_operand.hbm [shape: f32[2,8,256], index: 7, kind: output, shape index: {}]  }
   0x1   :  { %14 = vsyncpa [#allocation3 + $0x1], 0  ;;  %s1472_s24 = smov 0   ;;  %s1474_s25 = smov 0  }
   0x2   :  { %s1476_s26 = smov 0   ;;  %s1478_s27 = smov 0  }
   0x3   :  { %s1480_s28 = smov 0   ;;  %s1482_s29 = smov 0  }
   0x4 LB: > { %s1180_s30 = sadd.s32 4294967295, %s1426_s29   ;;  %s1181_s8 = sadd.s32 4294967294, %s1426_s29   ;;  %s1426_s29 = sphi %s1482_s29, %s20_s29   ;;  %s1422_s28 = sphi %s1480_s28, %s1973_s28   ;;  %s1418_s27 = sphi %s1478_s27, %s1972_s27   ;;  %s1414_s26 = sphi %s1476_s26, %s1971_s26   ;;  %s1410_s25 = sphi %s1474_s25, %s1970_s25   ;;  %s1406_s24 = sphi %s1472_s24, %s1969_s24  }
   0x5   : > { %s32_s9 = sadd.s32 1, %s1422_s28  ;;  %s195_s10 = sadd.s32 1, %s1414_s26 }
   0x6   : > { %p34_p0 = scmp.ge.s32.totalorder %s32_s9, 2  ;;  %p205_p1 = scmp.ne.s32.totalorder %s1414_s26, %s1410_s25 }
   0x7   : > { %p206_p2 = scmp.eq.s32.totalorder %s1180_s30, 1  ;;  %p211_p3 = scmp.ne.s32.totalorder %s1410_s25, %s1406_s24 }
   0x8   : > { %s1975_s9 = smov (%p34_p0, %s32_s9), 0  ;;  %p212_p5 = scmp.eq.s32.totalorder %s1181_s8, 1 }
   0x9   : > { %p1512_p4 = por %p206_p2, %p205_p1  ;;  %s190_s12 = ssub.s32 %s1422_s28, %s1975_s9 }
   0xa   : > { %p1184_p6 = scmp.ge.s32.totalorder %s1426_s29, 1  ;;  %p193_p7 = scmp.eq.s32.totalorder %s190_s12, 0 }
   0xb   : > { %p1519_p8 = por %p212_p5, %p211_p3  ;;  %p261_p9 = scmp.lt.s32.totalorder %s1426_s29, 3 }
   0xc   : > { %s1525_s14 = scalar_select %p193_p7, %s1414_s26, %s195_s10  }
   0xd   : > { %p262_p10 = pnand %p1184_p6, %p261_p9 }
   0xe   : > { %p298_p11 = scmp.lt.s32.totalorder (!%p262_p10), %s1418_s27, 1  ;;  %s294_s10 = sand.u32 (!%p262_p10), 1, %s1410_s25  }
   0xf   : > { %265 = sbr.rel (%p262_p10) target bundleno = 641 (0x281), region = 48  ;;  %s1250_s12 = sshll.u32 (!%p262_p10), %s1418_s27, 4 }
  0x10   : > { %s1086_s22 = scalar_lea.sflag (!%p262_p10), [#allocation3], %s294_s10 }
  0x14   : > { %v316_v0 = vld [vmem:[%s1960_s1 + $0x30] sm:$0xff]  ;;  %v315_v1 = vld [vmem:[%s1960_s1 + $0x28] sm:$0xff]  ;;  %v1428_v2 = vmov 2   ;;  %v1429_v3 = vmov 1   ;;  %v317_v4 = vld [vmem:[%s1960_s1 + $0x38] sm:$0xff]  ;;  %v1430_v5 = vmov 3  }
  0x15   : > { %1319 = vset.pattern.permute.xlu2 %v1428_v2  ;;  %1322 = vset.pattern.permute.xlu0 %v1429_v3  ;;  %v314_v6 = vld [vmem:[%s1960_s1 + $0x20] sm:$0xff]  ;;  %v313_v7 = vld [vmem:[%s1960_s1 + $0x18] sm:$0xff]  ;;  %v1431_v8 = vmov 0   ;;  %v312_v10 = vld [vmem:[%s1960_s1 + $0x10] sm:$0xff]  ;;  %s299_s23 = scalar_select %p298_p11, %s1418_s27, 1  ;;  %vm847_vm0 = vcmask 523264  }
  0x16   : > { %1318 = vset.pattern.permute.xlu1 %v1429_v3  ;;  %476 = vperm.xlu2 %1319, %v316_v0   ;;  %v1551_v9 = vld [vmem:[%s1960_s1] sm:$0xff]  ;;  %v597_v11 = vld [vmem:[%s1961_s2 + $0x30] sm:$0xff]  ;;  %v598_v12 = vld [vmem:[%s1961_s2 + $0x38] sm:$0xff] }
  0x17   : > { %406 = vperm.xlu1 %1318, %v316_v0   ;;  %402 = vperm.xlu0 %1322, %v315_v1   ;;  %v594_v13 = vld [vmem:[%s1961_s2 + $0x18] sm:$0xff]  ;;  %v311_v14 = vld [vmem:[%s1960_s1 + $0x8] sm:$0xff]  ;;  %v723_v15 = vld [vmem:[%s1963_s4 + $0x60] sm:$0xff]  ;;  %s1241_s15 = sshll.u32 %s299_s23, 3 }
  0x18   : > { %v722_v16 = vld [vmem:[%s1963_s4 + $0x58] sm:$0xff]  ;;  %v595_v18 = vld [vmem:[%s1961_s2 + $0x20] sm:$0xff]  ;;  %v717_v19 = vld [vmem:[%s1963_s4 + $0x30] sm:$0xff]  ;;  %s305_s18 = scalar_lea.vmem %s1959_s0, %s1241_s15  ;;  %s1185_s15 = sshll.u32 %s294_s10, 4 }
  0x19   : > { %v596_v20 = vld [vmem:[%s1961_s2 + $0x28] sm:$0xff]  ;;  %v711_v24 = vld [vmem:[%s1963_s4] sm:$0xff]  ;;  %v593_v27 = vld [vmem:[%s1961_s2 + $0x10] sm:$0xff]  ;;  %s296_s19 = scalar_lea.vmem [#allocation2], %s1185_s15 }
  0x1a   : > { %v716_v22 = vld [vmem:[%s1963_s4 + $0x28] sm:$0xff]  ;;  %v309_v29 = vld [vmem:[%s305_s18] sm:$0xff]  ;;  %v726_v53 = vld [vmem:[%s1963_s4 + $0x78] sm:$0xff]  ;;  %s1099_s18 = scalar_lea.hbm %s1966_s7, %s1250_s12  ;;  %s1101_s20 = sshll.u32 %s296_s19, 4  ;;  %s1102_s20 = int_to_ptr.vmem [resolvable:$true] %s1101_s20 }
  0x1b   : > { %v592_v31 = vld [vmem:[%s1961_s2 + $0x8] sm:$0xff]  ;;  %v591_v33 = vld [vmem:[%s1961_s2] sm:$0xff]  ;;  %v413_v34 = vperm.slane %v309_v29, 1  ;;  %v414_v35 = vperm.slane %v309_v29, 5  ;;  %v359_v36 = vperm.slane %v309_v29, 0  ;;  %v360_v37 = vperm.slane %v309_v29, 4 }
  0x1c   : > { %v483_v38 = vperm.slane %v309_v29, 2  ;;  %v484_v39 = vperm.slane %v309_v29, 6  ;;  %v553_v40 = vperm.slane %v309_v29, 3  ;;  %v554_v41 = vperm.slane %v309_v29, 7  ;;  %v725_v56 = vld [vmem:[%s1963_s4 + $0x70] sm:$0xff]  ;;  %s1103_s21 = sshll.u32 %s1099_s18, 4  ;;  %s1104_s21 = int_to_ptr.hbm [resolvable:$true] %s1103_s21 }
  0x1d   : > { %v1643_v43 = vperm.slane %v413_v34, 1  ;;  %v1645_v44 = vperm.slane %v414_v35, 1  ;;  %v1647_v45 = vperm.slane %v359_v36, 0  ;;  %v1649_v46 = vperm.slane %v360_v37, 0  ;;  %v714_v35 = vld [vmem:[%s1963_s4 + $0x18] sm:$0xff]  ;;  %s1362_s27 = sshra.s32 %s1104_s21, 4  ;;  %s1363_s27 = int_to_ptr.hbm [resolvable:$true] %s1362_s27 }
  0x1e   : > { %480 = vperm.xlu2 %1319, %v317_v4   ;;  %v1651_v47 = vperm.slane %v483_v38, 2  ;;  %v1653_v48 = vperm.slane %v484_v39, 2  ;;  %v1657_v51 = vperm.slane %v553_v40, 3  ;;  %v1659_v52 = vperm.slane %v554_v41, 3  ;;  %s1364_s23 = scalar_lea.hbm %s1363_s27, 16  ;;  %s1368_s12 = scalar_lea.hbm %s1966_s7, 32 }
  0x1f   : > { %410 = vperm.xlu1 %1318, %v317_v4   ;;  %1331 = vset.pattern.permute.xlu0 %v1430_v5  ;;  %p1365_p12 = scmp.ne.s32.totalorder %s1363_s27, %s1364_s23  ;;  %p1369_p1 = scmp.lt.s32.totalorder %s1363_s27, %s1966_s7 }
  0x20   : > { %542 = vperm.xlu0 %1331, %v315_v1   ;;  %p1370_p2 = scmp.lt.s32.totalorder %s1368_s12, %s1364_s23 }
  0x21   : > { %p1366_p13 = pnand %p1365_p12, %p1512_p4 }
  0x22   : > { %p1371_p3 = por %p1370_p2, %p1369_p1 }
  0x23   : > { %p1367_p0 = pneg %p1366_p13 }
  0x25   : > { %p1372_p5 = pnand %p1371_p3, %p1367_p0 }
  0x26   : > { %1321 = vset.pattern.permute.xlu2 %v1429_v3 }
  0x27   : > { %1320 = vset.pattern.permute.xlu1 %v1431_v8  ;;  %398 = vperm.xlu2 %1321, %v314_v6  }
  0x28   : > { %345 = vperm.xlu1 %1320, %v315_v1   ;;  %534 = vperm.xlu0 %1331, %v313_v7  }
  0x2f   : > { %1324 = vset.pattern.permute.xlu2 %v1430_v5 }
  0x30   : > { %1323 = vset.pattern.permute.xlu1 %v1430_v5  ;;  %522 = vperm.xlu0 %1331, %v1551_v9  }
  0x31   : > { %546 = vperm.xlu1 %1323, %v316_v0   ;;  %550 = vperm.xlu2 %1324, %v317_v4  }
  0x38   : > { %1344 = vset.pattern.permute.xlu0 %v1431_v8 }
  0x39   : > { %1325 = vset.pattern.permute.xlu1 %v1428_v2  ;;  %1326 = vset.pattern.permute.xlu2 %v1428_v2 }
  0x3a   : > { %350 = vperm.xlu0 %1344, %v316_v0   ;;  %468 = vperm.xlu1 %1325, %v314_v6  }
  0x3b   : > { %472 = vperm.xlu2 %1326, %v315_v1  }
  0x42   : > { %355 = vperm.xlu0 %1344, %v317_v4   ;;  %1327 = vset.pattern.permute.xlu1 %v1431_v8  ;;  %v721_v4 = vld [vmem:[%s1963_s4 + $0x50] sm:$0xff] }
  0x43   : > { %1328 = vset.pattern.permute.xlu2 %v1429_v3  ;;  %335 = vperm.xlu1 %1327, %v313_v7  }
  0x44   : > { %390 = vperm.xlu2 %1328, %v312_v10  }
  0x4a   : > { %340 = vperm.xlu0 %1344, %v314_v6  }
  0x4b   : > { %1329 = vset.pattern.permute.xlu1 %v1429_v3 }
  0x4c   : > { %1330 = vset.pattern.permute.xlu2 %v1430_v5  ;;  %394 = vperm.xlu1 %1329, %v313_v7  }
  0x4d   : > { %538 = vperm.xlu2 %1330, %v314_v6  }
  0x52   : > { %330 = vperm.xlu0 %1344, %v312_v10  }
  0x54   : > { %1332 = vset.pattern.permute.xlu1 %v1431_v8 }
  0x55   : > { %1333 = vset.pattern.permute.xlu2 %v1431_v8  ;;  %631 = vperm.xlu1 %1332, %v597_v11  }
  0x56   : > { %636 = vperm.xlu2 %1333, %v598_v12  }
  0x5a   : > { %320 = vperm.xlu0 %1344, %v1551_v9  }
  0x5d   : > { %1334 = vset.pattern.permute.xlu1 %v1428_v2 }
  0x5e   : > { %1335 = vset.pattern.permute.xlu2 %v1428_v2  ;;  %460 = vperm.xlu1 %1334, %v312_v10  }
  0x5f   : > { %464 = vperm.xlu2 %1335, %v313_v7  }
  0x62   : > { %616 = vperm.xlu0 %1344, %v594_v13   ;;  %v720_v13 = vld [vmem:[%s1963_s4 + $0x48] sm:$0xff] }
  0x66   : > { %1336 = vset.pattern.permute.xlu1 %v1431_v8 }
  0x67   : > { %1337 = vset.pattern.permute.xlu2 %v1429_v3  ;;  %325 = vperm.xlu1 %1336, %v311_v14  }
  0x68   : > { %382 = vperm.xlu2 %1337, %v1551_v9  }
  0x6a   : > { %789 = vperm.xlu0 %1344, %v723_v15  }
  0x6f   : > { %1338 = vset.pattern.permute.xlu1 %v1429_v3 }
  0x70   : > { %1339 = vset.pattern.permute.xlu2 %v1430_v5  ;;  %386 = vperm.xlu1 %1338, %v311_v14   ;;  %v1594_v17 = vpop.permute.xlu2 %476 }
  0x71   : > { %530 = vperm.xlu2 %1339, %v312_v10  }
  0x72   : > { %784 = vperm.xlu0 %1344, %v722_v16  }
  0x78   : > { %1340 = vset.pattern.permute.xlu1 %v1431_v8  ;;  %v1606_v21 = vpop.permute.xlu2 %480 }
  0x79   : > { %1341 = vset.pattern.permute.xlu2 %v1431_v8  ;;  %621 = vperm.xlu1 %1340, %v595_v18   ;;  %v503_v36 = vmul.f32 %v1651_v47, %v1606_v21  ;;  %v504_v37 = vmul.f32 %v1653_v48, %v1606_v21 }
  0x7a   : > { %759 = vperm.xlu0 %1344, %v717_v19   ;;  %626 = vperm.xlu2 %1341, %v596_v20   ;;  %v715_v19 = vld [vmem:[%s1963_s4 + $0x20] sm:$0xff]  ;;  %v718_v20 = vld [vmem:[%s1963_s4 + $0x38] sm:$0xff] }
  0x81   : > { %1342 = vset.pattern.permute.xlu1 %v1428_v2  ;;  %v1613_v23 = vpop.permute.xlu2 %398 }
  0x82   : > { %754 = vperm.xlu0 %1344, %v716_v22   ;;  %1343 = vset.pattern.permute.xlu2 %v1428_v2 }
  0x83   : > { %452 = vperm.xlu1 %1342, %v1551_v9   ;;  %456 = vperm.xlu2 %1343, %v311_v14  }
  0x89   : > { %v1622_v25 = vpop.permute.xlu1 %406  ;;  %v403_v26 = vpop.permute.xlu0 %402 }
  0x8a   : > { %729 = vperm.xlu0 %1344, %v711_v24   ;;  %v429_v49 = vmul.f32 %v1643_v43, %v403_v26  ;;  %v430_v50 = vmul.f32 %v1645_v44, %v403_v26  ;;  %v431_v40 = vmul.f32 %v1643_v43, %v1622_v25  ;;  %v432_v41 = vmul.f32 %v1645_v44, %v1622_v25 }
  0x8b   : > { %1345 = vset.pattern.permute.xlu1 %v1430_v5  ;;  %1346 = vset.pattern.permute.xlu2 %v1431_v8  ;;  %v1629_v28 = vpop.permute.xlu2 %550  ;;  %v502_v25 = vmul.f32 %v1653_v48, %v1594_v17 }
  0x8c   : > { %526 = vperm.xlu1 %1345, %v311_v14   ;;  %611 = vperm.xlu2 %1346, %v593_v27   ;;  %v719_v14 = vld [vmem:[%s1963_s4 + $0x40] sm:$0xff]  ;;  %v573_v21 = vmul.f32 %v1657_v51, %v1629_v28 }
  0x91   : > { %v1634_v30 = vpop.permute.xlu1 %410 }
  0x92   : > { %v543_v32 = vpop.permute.xlu0 %542  ;;  %v433_v29 = vmul.f32 %v1643_v43, %v1634_v30 }
  0x93   : > { %v569_v61 = vmul.f32 %v1657_v51, %v543_v32  ;;  %v570_v62 = vmul.f32 %v1659_v52, %v543_v32 }
  0x94   : > { %1347 = vset.pattern.permute.xlu1 %v1431_v8  ;;  %606 = vperm.xlu2 %1346, %v592_v31   ;;  %v724_v8 = vld [vmem:[%s1963_s4 + $0x68] sm:$0xff]  ;;  %v434_v31 = vmul.f32 %v1645_v44, %v1634_v30  ;;  %v713_v30 = vld [vmem:[%s1963_s4 + $0x10] sm:$0xff] }
  0x95   : > { %601 = vperm.xlu1 %1347, %v591_v33   ;;  %v473_v42 = vpop.permute.xlu2 %472 }
  0x96   : > { %v499_v59 = vmul.f32 %v1651_v47, %v473_v42  ;;  %v500_v60 = vmul.f32 %v1653_v48, %v473_v42 }
  0x9a   : > { %v346_v54 = vpop.permute.xlu1 %345  ;;  %v1664_v55 = vpop.permute.xlu0 %534 }
  0x9b   : > { %v375_v57 = vmul.f32 %v1647_v45, %v346_v54  ;;  %v376_v58 = vmul.f32 %v1649_v46, %v346_v54 }
  0x9c   : > { %804 = vperm.xlu2 %1346, %v726_v53   ;;  %v574_v53 = vmul.f32 %v1659_v52, %v1629_v28  ;;  %v712_v28 = vld [vmem:[%s1963_s4 + $0x8] sm:$0xff] }
  0x9d   : > { %v445_v63 = vadd.f32 %v429_v49, %v375_v57  ;;  %v446_v0 = vadd.f32 %v430_v50, %v376_v58  ;;  %799 = vperm.xlu1 %1347, %v725_v56   ;;  %v501_v58 = vmul.f32 %v1651_v47, %v1594_v17 }
  0x9e   : > { %v1675_v1 = vpop.permute.xlu2 %390 }
  0x9f   : > { %v515_v2 = vadd.f32 %v499_v59, %v445_v63  ;;  %v516_v3 = vadd.f32 %v500_v60, %v446_v0 }
  0xa1   : > { %v1680_v5 = vadd.f32 %v569_v61, %v515_v2  ;;  %v1682_v6 = vadd.f32 %v570_v62, %v516_v3  ;;  %v1051_v61 = vld [vmem:[%s1965_s6] sm:$0xff] }
  0xa2   : > { %v523_v7 = vpop.permute.xlu0 %522 }
  0xa3   : > { %v547_v9 = vpop.permute.xlu1 %546  ;;  %v1688_v10 = vmul.f32 %v1657_v51, %v523_v7  ;;  %v1691_v11 = vmul.f32 %v1659_v52, %v523_v7 }
  0xa4   : > { %779 = vperm.xlu2 %1346, %v721_v4   ;;  %v571_v2 = vmul.f32 %v1657_v51, %v547_v9  ;;  %v572_v3 = vmul.f32 %v1659_v52, %v547_v9 }
  0xa5   : > { %794 = vperm.xlu1 %1347, %v724_v8  }
  0xa7   : > { %v1693_v12 = vpop.permute.xlu2 %538 }
  0xac   : > { %v351_v15 = vpop.permute.xlu0 %350  ;;  %774 = vperm.xlu2 %1346, %v720_v13   ;;  %v1701_v16 = vpop.permute.xlu1 %468 }
  0xad   : > { %769 = vperm.xlu1 %1347, %v719_v14   ;;  %v377_v38 = vmul.f32 %v1647_v45, %v351_v15  ;;  %v378_v39 = vmul.f32 %v1649_v46, %v351_v15 }
  0xaf   : > { %v447_v54 = vadd.f32 %v431_v40, %v377_v38  ;;  %v448_v56 = vadd.f32 %v432_v41, %v378_v39 }
  0xb0   : > { %v637_v18 = vpop.permute.xlu2 %636 }
  0xb1   : > { %v517_v63 = vadd.f32 %v501_v58, %v447_v54  ;;  %v518_v0 = vadd.f32 %v502_v25, %v448_v56  ;;  %v428_v56 = vmul.f32 %v1645_v44, %v1613_v23 }
  0xb3   : > { %v587_v8 = vadd.f32 %v571_v2, %v517_v63  ;;  %v588_v13 = vadd.f32 %v572_v3, %v518_v0  ;;  %v424_v0 = vmul.f32 %v1645_v44, %v1675_v1 }
  0xb4   : > { %v356_v22 = vpop.permute.xlu0 %355  ;;  %749 = vperm.xlu2 %1346, %v715_v19  }
  0xb5   : > { %v379_v24 = vmul.f32 %v1647_v45, %v356_v22  ;;  %v380_v26 = vmul.f32 %v1649_v46, %v356_v22  ;;  %764 = vperm.xlu1 %1347, %v718_v20   ;;  %v1711_v27 = vpop.permute.xlu1 %335 }
  0xb7   : > { %v449_v32 = vadd.f32 %v433_v29, %v379_v24  ;;  %v450_v33 = vadd.f32 %v434_v31, %v380_v26 }
  0xb9   : > { %v1717_v34 = vpop.permute.xlu2 %464  ;;  %v519_v42 = vadd.f32 %v503_v36, %v449_v32  ;;  %v520_v49 = vadd.f32 %v504_v37, %v450_v33 }
  0xba   : > { %v495_v2 = vmul.f32 %v1651_v47, %v1717_v34  ;;  %v496_v3 = vmul.f32 %v1653_v48, %v1717_v34 }
  0xbb   : > { %v589_v59 = vadd.f32 %v573_v21, %v519_v42  ;;  %v590_v60 = vadd.f32 %v574_v53, %v520_v49  ;;  %v427_v53 = vmul.f32 %v1643_v43, %v1613_v23  ;;  %v423_v23 = vmul.f32 %v1643_v43, %v1675_v1 }
  0xbc   : > { %v341_v50 = vpop.permute.xlu0 %340  ;;  %744 = vperm.xlu2 %1346, %v714_v35  }
  0xbd   : > { %739 = vperm.xlu1 %1347, %v713_v30   ;;  %v653_v17 = vadd.f32 %v637_v18, %v589_v59  ;;  %v654_v7 = vadd.f32 %v637_v18, %v590_v60  ;;  %v373_v58 = vmul.f32 %v1647_v45, %v341_v50  ;;  %v374_v25 = vmul.f32 %v1649_v46, %v341_v50 }
  0xbe   : > { %v395_v57 = vpop.permute.xlu1 %394  ;;  %v497_v50 = vmul.f32 %v1651_v47, %v1701_v16 }
  0xbf   : > { %v669_v20 = vmax.f32 %v653_v17, 0.0  ;;  %v670_v22 = vmax.f32 %v654_v7, 0.0  ;;  %v425_v54 = vmul.f32 %v1643_v43, %v395_v57  ;;  %v426_v59 = vmul.f32 %v1645_v44, %v395_v57 }
  0xc0   : > { %v372_v57 = vmul.f32 %v1649_v46, %v1711_v27  ;;  %v443_v7 = vadd.f32 %v427_v53, %v373_v58 }
  0xc1   : > { %v685_v36 = vmin.f32 %v669_v20, 6.0  ;;  %v686_v18 = vmin.f32 %v670_v22, 6.0 }
  0xc2   : > { %v383_v62 = vpop.permute.xlu2 %382 }
  0xc3   : > { %v419_v29 = vmul.f32 %v1643_v43, %v383_v62  ;;  %v420_v31 = vmul.f32 %v1645_v44, %v383_v62  ;;  %v371_v62 = vmul.f32 %v1647_v45, %v1711_v27 }
  0xc4   : > { %v331_v4 = vpop.permute.xlu0 %330  ;;  %1054 = vperm.xlu2 %1346, %v1051_v61   ;;  %v565_v61 = vmul.f32 %v1657_v51, %v1664_v55 }
  0xc5   : > { %734 = vperm.xlu1 %1347, %v712_v28   ;;  %v369_v28 = vmul.f32 %v1647_v45, %v331_v4  ;;  %v370_v63 = vmul.f32 %v1649_v46, %v331_v4  ;;  %v441_v17 = vadd.f32 %v425_v54, %v371_v62 }
  0xc7   : > { %v632_v14 = vpop.permute.xlu1 %631 }
  0xc8   : > { %v651_v15 = vadd.f32 %v632_v14, %v587_v8  ;;  %v652_v19 = vadd.f32 %v632_v14, %v588_v13  ;;  %v444_v8 = vadd.f32 %v428_v56, %v374_v25  ;;  %v442_v13 = vadd.f32 %v426_v59, %v372_v57 }
  0xc9   : > { %v439_v14 = vadd.f32 %v423_v23, %v369_v28 }
  0xca   : > { %v667_v24 = vmax.f32 %v651_v15, 0.0  ;;  %v668_v26 = vmax.f32 %v652_v19, 0.0  ;;  %v440_v15 = vadd.f32 %v424_v0, %v370_v63 }
  0xcb   : > { %v531_v32 = vpop.permute.xlu2 %530 }
  0xcc   : > { %v683_v9 = vmin.f32 %v667_v24, 6.0  ;;  %v684_v33 = vmin.f32 %v668_v26, 6.0  ;;  %v321_v35 = vpop.permute.xlu0 %320 }
  0xcd   : > { %v365_v37 = vmul.f32 %v1647_v45, %v321_v35  ;;  %v366_v38 = vmul.f32 %v1649_v46, %v321_v35 }
  0xce   : > { %v709_v39 = vpack.c.bf16 %v685_v36, %v683_v9  ;;  %v710_v30 = vpack.c.bf16 %v686_v18, %v684_v33  ;;  %v511_v33 = vadd.f32 %v495_v2, %v441_v17  ;;  %v567_v18 = vmul.f32 %v1657_v51, %v1693_v12 }
  0xcf   : > { %v1755_v40 = vadd.f32 %v419_v29, %v365_v37  ;;  %v1757_v41 = vadd.f32 %v420_v31, %v366_v38  ;;  %v498_v29 = vmul.f32 %v1653_v48, %v1701_v16  ;;  %v563_v31 = vmul.f32 %v1657_v51, %v531_v32 }
  0xd0   : > { %v461_v42 = vpop.permute.xlu1 %460  ;;  %876 = vmatpush.bf16.msra.mxu0 %v709_v39  ;;  %1251 = vmatpush.bf16.msra.mxu2 %v709_v39  ;;  %v513_v37 = vadd.f32 %v497_v50, %v443_v7  ;;  %v566_v16 = vmul.f32 %v1659_v52, %v1664_v55  ;;  %v512_v38 = vadd.f32 %v496_v3, %v442_v13 }
  0xd1   : > { %925 = vmatpush.bf16.msra.mxu1 %v710_v30  ;;  %1255 = vmatpush.bf16.msra.mxu3 %v710_v30  ;;  %v493_v4 = vmul.f32 %v1651_v47, %v461_v42  ;;  %v494_v1 = vmul.f32 %v1653_v48, %v461_v42  ;;  %v581_v56 = vadd.f32 %v565_v61, %v511_v33 }
  0xd2   : > { %v583_v59 = vadd.f32 %v567_v18, %v513_v37 }
  0xd3   : > { %v509_v9 = vadd.f32 %v493_v4, %v439_v14  ;;  %v510_v35 = vadd.f32 %v494_v1, %v440_v15 }
  0xd4   : > { %v627_v49 = vpop.permute.xlu2 %626 }
  0xd5   : > { %v650_v53 = vadd.f32 %v627_v49, %v1682_v6  ;;  %v579_v54 = vadd.f32 %v563_v31, %v509_v9 }
  0xd7   : > { %v666_v23 = vmax.f32 %v650_v53, 0.0 }
  0xd9   : > { %v326_v21 = vpop.permute.xlu1 %325  ;;  %v682_v61 = vmin.f32 %v666_v23, 6.0 }
  0xda   : > { %v367_v19 = vmul.f32 %v1647_v45, %v326_v21  ;;  %v368_v27 = vmul.f32 %v1649_v46, %v326_v21  ;;  %v564_v45 = vmul.f32 %v1659_v52, %v531_v32  ;;  %v617_v21 = vpop.permute.xlu0 %616  ;;  %v649_v32 = vadd.f32 %v627_v49, %v1680_v5 }
  0xdb   : > { %v645_v62 = vadd.f32 %v617_v21, %v581_v56  ;;  %v1244_v56 = vld [vmem:[%s1962_s3 + $0x10] sm:$0xff] }
  0xdc   : > { %v580_v58 = vadd.f32 %v564_v45, %v510_v35  ;;  %v665_v55 = vmax.f32 %v649_v32, 0.0 }
  0xdd   : > { %v457_v60 = vpop.permute.xlu2 %456  ;;  %v661_v17 = vmax.f32 %v645_v62, 0.0 }
  0xde   : > { %v491_v22 = vmul.f32 %v1651_v47, %v457_v60  ;;  %v492_v24 = vmul.f32 %v1653_v48, %v457_v60  ;;  %v582_v60 = vadd.f32 %v566_v16, %v512_v38  ;;  %v681_v49 = vmin.f32 %v665_v55, 6.0 }
  0xe0   : > { %v646_v57 = vadd.f32 %v617_v21, %v582_v60 }
  0xe2   : > { %v387_v20 = vpop.permute.xlu1 %386  ;;  %v790_v60 = vpop.permute.xlu0 %789 }
  0xe3   : > { %v421_v34 = vmul.f32 %v1643_v43, %v387_v20  ;;  %v422_v26 = vmul.f32 %v1645_v44, %v387_v20  ;;  %v568_v43 = vmul.f32 %v1659_v52, %v1693_v12  ;;  %v514_v44 = vadd.f32 %v498_v29, %v444_v8 }
  0xe4   : > { %v662_v8 = vmax.f32 %v646_v57, 0.0 }
  0xe5   : > { %v437_v46 = vadd.f32 %v421_v34, %v367_v19  ;;  %v438_v36 = vadd.f32 %v422_v26, %v368_v27  ;;  %v584_v12 = vadd.f32 %v568_v43, %v514_v44  ;;  %v677_v19 = vmin.f32 %v661_v17, 6.0 }
  0xe6   : > { %v612_v39 = vpop.permute.xlu2 %611  ;;  %v678_v27 = vmin.f32 %v662_v8, 6.0 }
  0xe7   : > { %v507_v30 = vadd.f32 %v491_v22, %v437_v46  ;;  %v508_v42 = vadd.f32 %v492_v24, %v438_v36  ;;  %v643_v25 = vadd.f32 %v612_v39, %v579_v54  ;;  %v644_v28 = vadd.f32 %v612_v39, %v580_v58  ;;  %v1248_v54 = vld [vmem:[%s1962_s3 + $0x30] sm:$0xff]  ;;  %v1249_v58 = vld [vmem:[%s1962_s3 + $0x38] sm:$0xff] }
  0xe9   : > { %v659_v2 = vmax.f32 %v643_v25, 0.0  ;;  %v660_v6 = vmax.f32 %v644_v28, 0.0  ;;  %v1245_v25 = vld [vmem:[%s1962_s3 + $0x18] sm:$0xff] }
  0xea   : > { %v1853_v28 = vpop.permute.xlu0 %784 }
  0xeb   : > { %v622_v63 = vpop.permute.xlu1 %621  ;;  %v675_v13 = vmin.f32 %v659_v2, 6.0  ;;  %v676_v15 = vmin.f32 %v660_v6, 6.0 }
  0xec   : > { %v647_v0 = vadd.f32 %v622_v63, %v583_v59  ;;  %v648_v50 = vadd.f32 %v622_v63, %v584_v12  ;;  %v1246_v59 = vld [vmem:[%s1962_s3 + $0x20] sm:$0xff] }
  0xed   : > { %v705_v34 = vpack.c.bf16 %v677_v19, %v675_v13  ;;  %v706_v26 = vpack.c.bf16 %v678_v27, %v676_v15 }
  0xee   : > { %v663_v3 = vmax.f32 %v647_v0, 0.0  ;;  %v664_v5 = vmax.f32 %v648_v50, 0.0  ;;  %v607_v36 = vpop.permute.xlu2 %606 }
  0xf0   : > { %v679_v4 = vmin.f32 %v663_v3, 6.0  ;;  %v680_v7 = vmin.f32 %v664_v5, 6.0 }
  0xf2   : > { %v707_v1 = vpack.c.bf16 %v681_v49, %v679_v4  ;;  %v708_v14 = vpack.c.bf16 %v682_v61, %v680_v7  ;;  %v1857_v55 = vpop.permute.xlu0 %759 }
  0xf4   : > { %877 = vmatpush.bf16.msra.mxu0 %v707_v1  ;;  %1252 = vmatpush.bf16.msra.mxu2 %v707_v1 }
  0xf5   : > { %v453_v20 = vpop.permute.xlu1 %452  ;;  %926 = vmatpush.bf16.msra.mxu1 %v708_v14  ;;  %1256 = vmatpush.bf16.msra.mxu3 %v708_v14 }
  0xf6   : > { %v489_v22 = vmul.f32 %v1651_v47, %v453_v20  ;;  %v490_v24 = vmul.f32 %v1653_v48, %v453_v20 }
  0xf8   : > { %v505_v29 = vadd.f32 %v489_v22, %v1755_v40  ;;  %v506_v31 = vadd.f32 %v490_v24, %v1757_v41  ;;  %878 = vmatpush.bf16.msra.mxu0 %v705_v34  ;;  %1253 = vmatpush.bf16.msra.mxu2 %v705_v34 }
  0xf9   : > { %927 = vmatpush.bf16.msra.mxu1 %v706_v26  ;;  %1257 = vmatpush.bf16.msra.mxu3 %v706_v26 }
  0xfa   : > { %v575_v9 = vadd.f32 %v1688_v10, %v505_v29  ;;  %v576_v33 = vadd.f32 %v1691_v11, %v506_v31  ;;  %v1861_v0 = vpop.permute.xlu0 %754 }
  0xfe   : > { %v527_v45 = vpop.permute.xlu1 %526 }
  0xff   : > { %v561_v35 = vmul.f32 %v1657_v51, %v527_v45  ;;  %v562_v47 = vmul.f32 %v1659_v52, %v527_v45  ;;  %v1242_v52 = vld [vmem:[%s1962_s3] sm:$0xff] }
 0x101   : > { %v577_v48 = vadd.f32 %v561_v35, %v507_v30  ;;  %v578_v46 = vadd.f32 %v562_v47, %v508_v42  ;;  %v1247_v30 = vld [vmem:[%s1962_s3 + $0x28] sm:$0xff] }
 0x102   : > { %v1243_v42 = vld [vmem:[%s1962_s3 + $0x8] sm:$0xff]  ;;  %v730_v3 = vpop.permute.xlu0 %729 }
 0x103   : > { %v641_v18 = vadd.f32 %v607_v36, %v577_v48  ;;  %v642_v40 = vadd.f32 %v607_v36, %v578_v46 }
 0x105   : > { %v657_v44 = vmax.f32 %v641_v18, 0.0  ;;  %v658_v16 = vmax.f32 %v642_v40, 0.0 }
 0x107   : > { %v602_v43 = vpop.permute.xlu1 %601  ;;  %v673_v11 = vmin.f32 %v657_v44, 6.0  ;;  %v674_v32 = vmin.f32 %v658_v16, 6.0 }
 0x108   : > { %v639_v41 = vadd.f32 %v602_v43, %v575_v9  ;;  %v640_v37 = vadd.f32 %v602_v43, %v576_v33  ;;  %v805_v43 = vpop.permute.xlu2 %804 }
 0x10a   : > { %v655_v38 = vmax.f32 %v639_v41, 0.0  ;;  %v656_v39 = vmax.f32 %v640_v37, 0.0 }
 0x10c   : > { %v671_v10 = vmin.f32 %v655_v38, 6.0  ;;  %v672_v21 = vmin.f32 %v656_v39, 6.0 }
 0x10e   : > { %v703_v53 = vpack.c.bf16 %v673_v11, %v671_v10  ;;  %v704_v51 = vpack.c.bf16 %v674_v32, %v672_v21 }
 0x10f   : > { %v800_v12 = vpop.permute.xlu1 %799 }
 0x110   : > { %879 = vmatpush.bf16.msra.mxu0 %v703_v53  ;;  %1254 = vmatpush.bf16.msra.mxu2 %v703_v53 }
 0x111   : > { %928 = vmatpush.bf16.msra.mxu1 %v704_v51  ;;  %1258 = vmatpush.bf16.msra.mxu3 %v704_v51 }
 0x113   : > { %1220 = vmatmul.msk.bf16.vlgmr.msra.gmra.mxu0 %vm847_vm0, %v1242_v52  ;;  %1225 = vmatmul.msk.bf16.vlgmr.msra.gmra.mxu2 %vm847_vm0, %v1247_v30 }
 0x114   : > { %1228 = vmatmul.msk.bf16.vlgmr.msra.gmra.mxu1 %vm847_vm0, %v1242_v52  ;;  %1233 = vmatmul.msk.bf16.vlgmr.msra.gmra.mxu3 %vm847_vm0, %v1247_v30  ;;  %v780_v30 = vpop.permute.xlu2 %779 }
 0x117   : > { %v795_v62 = vpop.permute.xlu1 %794 }
 0x11f   : > { %v1855_v63 = vpop.permute.xlu1 %769 }
 0x123   : > { %1221 = vmatmul.msk.bf16.gmra.mxu0 %vm847_vm0, %v1243_v42  ;;  %1226 = vmatmul.msk.bf16.gmra.mxu2 %vm847_vm0, %v1248_v54 }
 0x124   : > { %1229 = vmatmul.msk.bf16.gmra.mxu1 %vm847_vm0, %v1243_v42  ;;  %1234 = vmatmul.msk.bf16.gmra.mxu3 %vm847_vm0, %v1248_v54 }
 0x127   : > { %v1859_v23 = vpop.permute.xlu1 %764 }
 0x12f   : > { %v1863_v50 = vpop.permute.xlu1 %739 }
 0x133   : > { %1222 = vmatmul.msk.bf16.gmra.mxu0 %vm847_vm0, %v1244_v56  ;;  %1227 = vmatmul.msk.bf16.gmra.mxu2 %vm847_vm0, %v1249_v58 }
 0x134   : > { %1230 = vmatmul.msk.bf16.gmra.mxu1 %vm847_vm0, %v1244_v56  ;;  %1235 = vmatmul.msk.bf16.gmra.mxu3 %vm847_vm0, %v1249_v58 }
 0x137   : > { %v735_v61 = vpop.permute.xlu1 %734 }
 0x143   : > { %1223 = vmatmul.msk.bf16.gmra.mxu0 %vm847_vm0, %v1245_v25 }
 0x144   : > { %1231 = vmatmul.msk.bf16.gmra.mxu1 %vm847_vm0, %v1245_v25 }
 0x153   : > { %1224 = vmatmul.msk.bf16.gmra.mxu0 %vm847_vm0, %v1246_v59 }
 0x154   : > { %1232 = vmatmul.msk.bf16.gmra.mxu1 %vm847_vm0, %v1246_v59 }
 0x190   : > { %v881_v57 = vpop.f32.mrf.mxu0 }
 0x191   : > { %v930_v2 = vpop.f32.mrf.mxu1  ;;  %v882_v5 = vadd.f32 %v881_v57, %v730_v3 }
 0x192   : > { %v931_v17 = vadd.f32 %v930_v2, %v730_v3 }
 0x193   : > { %v970_v7 = vmax.f32 %v882_v5, 0.0 }
 0x194   : > { %v971_v1 = vmax.f32 %v931_v17, 0.0 }
 0x195   : > { %v1865_v27 = vmin.f32 %v970_v7, 6.0 }
 0x196   : > { %v906_v6 = vpop.f32.mrf.mxu2  ;;  %v1869_v22 = vmin.f32 %v971_v1, 6.0 }
 0x197   : > { %v955_v49 = vpop.f32.mrf.mxu3 }
 0x198   : > { %v883_v4 = vpop.f32.mrf.mxu0  ;;  %v956_v7 = vadd.f32 %v955_v49, %v780_v30  ;;  %v775_v49 = vpop.permute.xlu2 %774 }
 0x199   : > { %v884_v8 = vadd.f32 %v883_v4, %v735_v61  ;;  %v932_v13 = vpop.f32.mrf.mxu1 }
 0x19a   : > { %v933_v14 = vadd.f32 %v932_v13, %v735_v61 }
 0x19b   : > { %v972_v15 = vmax.f32 %v884_v8, 0.0 }
 0x19c   : > { %v973_v19 = vmax.f32 %v933_v14, 0.0 }
 0x19d   : > { %v1867_v20 = vmin.f32 %v972_v15, 6.0 }
 0x19e   : > { %v1871_v24 = vmin.f32 %v973_v19, 6.0  ;;  %v908_v34 = vpop.f32.mrf.mxu2 }
 0x19f   : > { %v957_v26 = vpop.f32.mrf.mxu3  ;;  %v1035_v29 = vpack.c.bf16 %v1867_v20, %v1865_v27  ;;  %v909_v25 = vadd.f32 %v908_v34, %v1853_v28 }
 0x1a0   : > { %v1875_v31 = vpop.f32.mrf.mxu0  ;;  %v1036_v9 = vpack.c.bf16 %v1871_v24, %v1869_v22  ;;  %v958_v3 = vadd.f32 %v957_v26, %v1853_v28  ;;  %v991_v28 = vmax.f32 %v956_v7, 0.0 }
 0x1a1   : > { %v1879_v33 = vpop.f32.mrf.mxu1  ;;  %v992_v1 = vmax.f32 %v909_v25, 0.0 }
 0x1a2   : > { %v993_v19 = vmax.f32 %v958_v3, 0.0 }
 0x1a6   : > { %v911_v45 = vpop.f32.mrf.mxu2 }
 0x1a7   : > { %v960_v35 = vpop.f32.mrf.mxu3  ;;  %v912_v32 = vadd.f32 %v911_v45, %v790_v60 }
 0x1a8   : > { %v1881_v47 = vpop.f32.mrf.mxu0  ;;  %v961_v42 = vadd.f32 %v960_v35, %v790_v60 }
 0x1a9   : > { %v1883_v48 = vpop.f32.mrf.mxu1  ;;  %v994_v17 = vmax.f32 %v912_v32, 0.0 }
 0x1aa   : > { %v995_v8 = vmax.f32 %v961_v42, 0.0 }
 0x1ac   : > { %v1027_v26 = vmin.f32 %v995_v8, 6.0 }
 0x1ae   : > { %v913_v46 = vpop.f32.mrf.mxu2 }
 0x1af   : > { %v962_v36 = vpop.f32.mrf.mxu3  ;;  %v914_v10 = vadd.f32 %v913_v46, %v795_v62  ;;  %v1026_v46 = vmin.f32 %v994_v17, 6.0 }
 0x1b0   : > { %v1885_v18 = vpop.f32.mrf.mxu0  ;;  %v963_v21 = vadd.f32 %v962_v36, %v795_v62  ;;  %v907_v62 = vadd.f32 %v906_v6, %v780_v30  ;;  %v1024_v36 = vmin.f32 %v992_v1, 6.0 }
 0x1b1   : > { %v1887_v40 = vpop.f32.mrf.mxu1  ;;  %v996_v59 = vmax.f32 %v914_v10, 0.0  ;;  %v1023_v10 = vmin.f32 %v991_v28, 6.0 }
 0x1b2   : > { %v990_v35 = vmax.f32 %v907_v62, 0.0 }
 0x1b3   : > { %v1028_v14 = vmin.f32 %v996_v59, 6.0 }
 0x1b6   : > { %v916_v41 = vpop.f32.mrf.mxu2 }
 0x1b7   : > { %v965_v37 = vpop.f32.mrf.mxu3  ;;  %v917_v38 = vadd.f32 %v916_v41, %v800_v12  ;;  %v1047_v41 = vpack.c.bf16 %v1028_v14, %v1026_v46 }
 0x1b8   : > { %v1889_v44 = vpop.f32.mrf.mxu0  ;;  %v966_v39 = vadd.f32 %v965_v37, %v800_v12  ;;  %v997_v12 = vmax.f32 %v963_v21, 0.0  ;;  %v1025_v37 = vmin.f32 %v993_v19, 6.0 }
 0x1b9   : > { %v1891_v16 = vpop.f32.mrf.mxu1  ;;  %v998_v53 = vmax.f32 %v917_v38, 0.0  ;;  %v894_v17 = vadd.f32 %v1889_v44, %v1861_v0 }
 0x1ba   : > { %v999_v54 = vmax.f32 %v966_v39, 0.0  ;;  %v1029_v34 = vmin.f32 %v997_v12, 6.0  ;;  %v1022_v39 = vmin.f32 %v990_v35, 6.0 }
 0x1bb   : > { %v1030_v61 = vmin.f32 %v998_v53, 6.0  ;;  %v980_v19 = vmax.f32 %v894_v17, 0.0 }
 0x1bc   : > { %v1031_v13 = vmin.f32 %v999_v54, 6.0  ;;  %v1048_v38 = vpack.c.bf16 %v1029_v34, %v1027_v26  ;;  %v1045_v21 = vpack.c.bf16 %v1024_v36, %v1022_v39 }
 0x1be   : > { %v918_v11 = vpop.f32.mrf.mxu2 }
 0x1bf   : > { %v919_v51 = vadd.f32 %v918_v11, %v805_v43  ;;  %v967_v52 = vpop.f32.mrf.mxu3  ;;  %v1046_v11 = vpack.c.bf16 %v1025_v37, %v1023_v10 }
 0x1c0   : > { %v968_v56 = vadd.f32 %v967_v52, %v805_v43  ;;  %v896_v58 = vpop.f32.mrf.mxu0 }
 0x1c1   : > { %v1000_v57 = vmax.f32 %v919_v51, 0.0  ;;  %v945_v2 = vpop.f32.mrf.mxu1  ;;  %v750_v51 = vpop.permute.xlu2 %749  ;;  %v897_v25 = vadd.f32 %v896_v58, %v1857_v55 }
 0x1c2   : > { %v1001_v5 = vmax.f32 %v968_v56, 0.0  ;;  %v946_v12 = vadd.f32 %v945_v2, %v1857_v55  ;;  %v892_v8 = vadd.f32 %v1885_v18, %v750_v51  ;;  %v941_v55 = vadd.f32 %v1887_v40, %v750_v51 }
 0x1c3   : > { %v1032_v4 = vmin.f32 %v1000_v57, 6.0  ;;  %v982_v58 = vmax.f32 %v897_v25, 0.0  ;;  %v887_v18 = vadd.f32 %v1875_v31, %v1863_v50  ;;  %v936_v40 = vadd.f32 %v1879_v33, %v1863_v50 }
 0x1c4   : > { %v1033_v60 = vmin.f32 %v1001_v5, 6.0  ;;  %v983_v2 = vmax.f32 %v946_v12, 0.0  ;;  %v978_v28 = vmax.f32 %v892_v8, 0.0 }
 0x1c5   : > { %v1049_v15 = vpack.c.bf16 %v1032_v4, %v1030_v61  ;;  %v1014_v26 = vmin.f32 %v982_v58, 6.0  ;;  %v975_v10 = vmax.f32 %v936_v40, 0.0 }
 0x1c6   : > { %v1050_v45 = vpack.c.bf16 %v1033_v60, %v1031_v13  ;;  %v1015_v36 = vmin.f32 %v983_v2, 6.0  ;;  %v1010_v39 = vmin.f32 %v978_v28, 6.0 }
 0x1c7   : > { %1057 = vmatpush.bf16.msrb.mxu2 %v1049_v15 }
 0x1c8   : > { %1070 = vmatpush.bf16.msrb.mxu3 %v1050_v45  ;;  %v898_v6 = vpop.f32.mrf.mxu0 }
 0x1c9   : > { %v947_v43 = vpop.f32.mrf.mxu1  ;;  %v899_v42 = vadd.f32 %v898_v6, %v1859_v23  ;;  %v745_v1 = vpop.permute.xlu2 %744  ;;  %v979_v6 = vmax.f32 %v941_v55, 0.0 }
 0x1ca   : > { %v948_v54 = vadd.f32 %v947_v43, %v1859_v23  ;;  %v889_v44 = vadd.f32 %v1881_v47, %v745_v1  ;;  %v1012_v43 = vmin.f32 %v980_v19, 6.0 }
 0x1cb   : > { %1058 = vmatpush.bf16.msrb.mxu2 %v1047_v41  ;;  %v984_v61 = vmax.f32 %v899_v42, 0.0  ;;  %v1011_v31 = vmin.f32 %v979_v6, 6.0 }
 0x1cc   : > { %1071 = vmatpush.bf16.msrb.mxu3 %v1048_v38  ;;  %v985_v7 = vmax.f32 %v948_v54, 0.0  ;;  %v976_v47 = vmax.f32 %v889_v44, 0.0  ;;  %v974_v38 = vmax.f32 %v887_v18, 0.0 }
 0x1cd   : > { %v1016_v34 = vmin.f32 %v984_v61, 6.0 }
 0x1ce   : > { %v1017_v35 = vmin.f32 %v985_v7, 6.0  ;;  %v1006_v33 = vmin.f32 %v974_v38, 6.0 }
 0x1cf   : > { %1059 = vmatpush.bf16.msrb.mxu2 %v1045_v21  ;;  %v1041_v41 = vpack.c.bf16 %v1016_v34, %v1014_v26  ;;  %v1008_v21 = vmin.f32 %v976_v47, 6.0 }
 0x1d0   : > { %1072 = vmatpush.bf16.msrb.mxu3 %v1046_v11  ;;  %v901_v32 = vpop.f32.mrf.mxu0  ;;  %v1042_v37 = vpack.c.bf16 %v1017_v35, %v1015_v36  ;;  %v1039_v11 = vpack.c.bf16 %v1012_v43, %v1010_v39 }
 0x1d1   : > { %v950_v53 = vpop.f32.mrf.mxu1  ;;  %v902_v52 = vadd.f32 %v901_v32, %v1855_v63  ;;  %v1037_v51 = vpack.c.bf16 %v1008_v21, %v1006_v33  ;;  %v1055_v27 = vpop.permute.xlu2 %1054 }
 0x1d2   : > { %v951_v30 = vadd.f32 %v950_v53, %v1855_v63  ;;  %v943_v63 = vadd.f32 %v1891_v16, %v1861_v0  ;;  %v938_v0 = vadd.f32 %v1883_v48, %v745_v1  ;;  %v1007_v53 = vmin.f32 %v975_v10, 6.0 }
 0x1d3   : > { %v986_v59 = vmax.f32 %v902_v52, 0.0 }
 0x1d4   : > { %v987_v5 = vmax.f32 %v951_v30, 0.0  ;;  %v981_v16 = vmax.f32 %v943_v63, 0.0  ;;  %v1034_v30 = vld [vmem:[%s1964_s5] sm:$0xf] }
 0x1d5   : > { %v1018_v13 = vmin.f32 %v986_v59, 6.0 }
 0x1d6   : > { %v1019_v14 = vmin.f32 %v987_v5, 6.0  ;;  %v1013_v48 = vmin.f32 %v981_v16, 6.0 }
 0x1d8   : > { %v903_v56 = vpop.f32.mrf.mxu0  ;;  %v1040_v50 = vpack.c.bf16 %v1013_v48, %v1011_v31 }
 0x1d9   : > { %v904_v57 = vadd.f32 %v903_v56, %v775_v49  ;;  %v952_v3 = vpop.f32.mrf.mxu1 }
 0x1da   : > { %v953_v62 = vadd.f32 %v952_v3, %v775_v49  ;;  %v977_v49 = vmax.f32 %v938_v0, 0.0 }
 0x1db   : > { %v988_v4 = vmax.f32 %v904_v57, 0.0 }
 0x1dc   : > { %v989_v23 = vmax.f32 %v953_v62, 0.0  ;;  %v1009_v32 = vmin.f32 %v977_v49, 6.0 }
 0x1dd   : > { %v1020_v60 = vmin.f32 %v988_v4, 6.0 }
 0x1de   : > { %v1021_v15 = vmin.f32 %v989_v23, 6.0  ;;  %v1038_v52 = vpack.c.bf16 %v1009_v32, %v1007_v53 }
 0x1df   : > { %v1043_v45 = vpack.c.bf16 %v1020_v60, %v1018_v13 }
 0x1e0   : > { %v1044_v46 = vpack.c.bf16 %v1021_v15, %v1019_v14 }
 0x1e1   : > { %1060 = vmatpush.bf16.msrb.mxu2 %v1043_v45 }
 0x1e2   : > { %1073 = vmatpush.bf16.msrb.mxu3 %v1044_v46 }
 0x1e5   : > { %1061 = vmatpush.bf16.msrb.mxu2 %v1041_v41 }
 0x1e6   : > { %1074 = vmatpush.bf16.msrb.mxu3 %v1042_v37 }
 0x1e9   : > { %1062 = vmatpush.bf16.msrb.mxu2 %v1039_v11 }
 0x1ea   : > { %1075 = vmatpush.bf16.msrb.mxu3 %v1040_v50 }
 0x1ed   : > { %1063 = vmatpush.bf16.msrb.mxu2 %v1037_v51 }
 0x1ee   : > { %1076 = vmatpush.bf16.msrb.mxu3 %v1038_v52 }
 0x1f1   : > { %1064 = vmatpush.bf16.msrb.mxu2 %v1035_v29 }
 0x1f2   : > { %1077 = vmatpush.bf16.msrb.mxu3 %v1036_v9 }
 0x1f4   : > { %1065 = vmatmul.bf16.vlgmr.msrb.gmra.mxu2 %v1034_v30 }
 0x1f5   : > { %1078 = vmatmul.bf16.vlgmr.msrb.gmra.mxu3 %v1034_v30 }
 0x277   : > { %v1066_v20 = vpop.f32.mrf.mxu2 }
 0x278   : > { %v1067_v29 = vadd.f32 %v1066_v20, %v1055_v27  ;;  %v1079_v42 = vpop.f32.mrf.mxu3 }
 0x279   : > { %v1080_v54 = vadd.f32 %v1079_v42, %v1055_v27 }
 0x27a   : > { %1083 = vst [vmem:[%s296_s19] sm:$0xff] %v1067_v29 }
 0x27b   : > { %1084 = vst [vmem:[%s296_s19 + $0x8] sm:$0xff] %v1080_v54 }
 0x27c   : > { %1375 = shalt.err (!%p1372_p5)
}
 0x27d   : > { %1259 = dma.vmem_to_hbm [thread:$0]  (%p1512_p4), %s1102_s20, 256, %s1104_s21, %s1086_s22  }
 0x27f   : > { %v1068_v22 = vpop.f32.mrf.mxu2 }
 0x280   : > { %v1081_v24 = vpop.f32.mrf.mxu3 }
 0x281 PF: > { %p1265_p6 = scmp.ge.s32.totalorder %s1426_s29, 2  ;;  %s1115_s10 = sand.u32 1, %s1406_s24  }
 0x282   : > { %s1116_s17 = scalar_lea.sflag [#allocation3], %s1115_s10 }
 0x283   : > { %p1262_p7 = pnand %p1265_p6, %p1519_p8 }
 0x285   : > { %p1263_p9 = pneg %p1262_p7 }
 0x287   : > { %1401 = dma.done.wait (%p1263_p9), %s1116_s17, 256  }
 0x288   : > { %1403 = vsyncadd (%p1263_p9), %s1116_s17, 4294967040  ;;  %s20_s29 = sadd.s32 1, %s1426_s29   ;;  %s1969_s24 = smov %s1410_s25 }
 0x289   : > { %p17_p10 = scmp.ge.s32.totalorder %s20_s29, 4   ;;  %s1970_s25 = smov %s1414_s26 }
 0x28a   : > { %s1971_s26 = smov %s1525_s14  ;;  %s1972_s27 = smov %s1422_s28 }
 0x28b   : > { %s1973_s28 = smov %s1975_s9  ;;  %19 = sbr.rel (!%p17_p10) target bundleno = 4 (0x4), region = 83 }
 0x290   :  { %1122 = vsyncpa [#allocation3], 1 }
 0x291   :  { %1124 = vsyncpa [#allocation3 + $0x1], 1 }

</bundles_post_ra>
